<compile_context>
chip_gen: v7x
topology: tpu7x:2x2x1
jax: 0.10.0
libtpu: 0.0.40
codegen_flags: <defaults>
</compile_context>

<pallas_src>
import functools

import jax
import jax.numpy as jnp
from jax.experimental import pallas as pl
from jax.experimental.pallas import tpu as pltpu


def _round_up(n: int, m: int) -> int:
    return ((n + m - 1) // m) * m


def _cdiv(a: int, b: int) -> int:
    return (a + b - 1) // b


def _resident_spec(shape):
    """BlockSpec pinned at block (0, 0) and single-buffered (constant index map)."""
    idx = lambda i: (0,) * len(shape)
    if hasattr(pl, "Buffered"):
        try:
            return pl.BlockSpec(shape, idx, pipeline_mode=pl.Buffered(1))
        except TypeError:      # very old Pallas without pipeline_mode
            pass
    return pl.BlockSpec(shape, idx)


def dec_kernel(x_ref, w_ref, b_ref, ct_ref, cn_ref, o_ref, *,
               alpha: float, n_clusters: int):
    # ---- encoder: linear layer on the MXU (f32 accumulation) ----
    x = x_ref[...].astype(w_ref.dtype)                                    # streamed tile
    z = jnp.dot(x, w_ref[...], preferred_element_type=jnp.float32) + b_ref[...]   # [TB, H] f32

    # ---- pairwise squared distance via MXU:  ||z||^2 + ||c||^2 - 2 z @ c^T ----
    zc = jnp.dot(z.astype(ct_ref.dtype), ct_ref[...],
                 preferred_element_type=jnp.float32)                      # [TB, K_pad]
    z_norm = jnp.sum(z * z, axis=1, keepdims=True)                        # [TB, 1] f32
    # clamp: the expansion can go slightly negative from cancellation
    norm_sq = jnp.maximum(z_norm + cn_ref[...] - 2.0 * zc, 0.0)           # [TB, K_pad]

    # ---- Student's-t soft assignment ----
    # numerator reciprocal may be approximate (EUP, ~free; normalisation below
    # mostly cancels the common-mode error)
    num = pl.reciprocal(1.0 + norm_sq * (1.0 / alpha), approx=True)
    if alpha != 1.0:          # compile-time constant; pow is a no-op at alpha == 1
        num = num ** (float(alpha + 1.0) / 2.0)

    # Exact reciprocal for the row normalisation so rows sum to 1 (approx recip
    # here only gives ~8 bits). Epsilon guards rows where every num underflows.
    denom = jnp.sum(num, axis=1, keepdims=True) + 1e-30                   # [TB, 1]
    out = num * pl.reciprocal(denom, approx=False)                        # [TB, K_pad]
    o_ref[...] = out[:, :n_clusters].astype(o_ref.dtype)                  # store real clusters only


def dec_forward(x, W, b, centers, alpha: float = 1.0, *,
                batch_tile: int = 512, compute_dtype=jnp.float32):
    """Fused DEC forward.  x:[B,Din]  W:[Din,H]  b:[H]  centers:[K,H] -> [B,K] f32."""
    B, Din = x.shape
    H = W.shape[1]
    K = centers.shape[0]

    # Lane-dense intermediate width: pad the cluster axis to a multiple of 128.
    K_pad = _round_up(K, 128)

    # Batch tile: multiple of 8 sublanes, capped at ceil(B/2) so both v7x
    # TensorCores get grid iterations when the batch allows it.
    if B >= 16:
        TB = min(batch_tile, _round_up(_cdiv(B, 2), 8))
    else:
        TB = min(batch_tile, _round_up(B, 8))
    TB = max(8, _round_up(TB, 8))

    c_item = jnp.dtype(compute_dtype).itemsize
    x_item = jnp.dtype(x.dtype).itemsize

    def vmem_need(tb):
        return (2 * tb * Din * x_item            # x stream, double-buffered
                + Din * H * c_item               # W          (single buffer)
                + H * K_pad * c_item             # centers^T  (single buffer)
                + (H + K_pad) * 4                # bias, ||c||^2
                + 2 * tb * K * 4                 # output, double-buffered
                + (tb * H + 4 * tb * K_pad) * 4)  # in-kernel f32 temporaries

    # v7x has only 64 MiB VMEM per core: shrink the tile until the budget fits.
    while TB > 8 and vmem_need(TB) > (44 << 20):
        TB = max(8, _round_up(TB // 2, 8))
    nb = _cdiv(B, TB)
    vmem_limit = min(max(int(1.25 * vmem_need(TB)) + (2 << 20), 16 << 20), 64 << 20)

    # Resident operands, prepared once (tiny one-time work; residents stay in VMEM).
    centers_p = jnp.pad(centers.astype(jnp.float32), ((0, K_pad - K), (0, 0)))  # [K_pad, H]
    c_norm = jnp.sum(centers_p * centers_p, axis=1)[None, :]                    # [1, K_pad]
    if K_pad != K:
        # Fold the padded-cluster mask into ||c||^2: huge distance -> num ~ 0.
        c_norm = jnp.where(jnp.arange(K_pad)[None, :] < K, c_norm, jnp.float32(1e30))
    centers_t = centers_p.T.astype(compute_dtype)                               # [H, K_pad]
    W_c = W.astype(compute_dtype)                                               # [Din, H]
    b2 = b.reshape(1, H).astype(jnp.float32)                                    # [1, H]

    kernel = functools.partial(dec_kernel, alpha=float(alpha), n_clusters=K)

    return pl.pallas_call(
        kernel,
        out_shape=jax.ShapeDtypeStruct((B, K), jnp.float32),
        grid=(nb,),
        in_specs=[
            # x tile, streamed & double-buffered. Ragged last block is fine:
            # rows are independent and OOB output stores are dropped.
            pl.BlockSpec((TB, Din), lambda i: (i, 0)),
            _resident_spec((Din, H)),        # W           (resident, single buffer)
            _resident_spec((1, H)),          # bias        (resident, single buffer)
            _resident_spec((H, K_pad)),      # centers^T   (resident, single buffer)
            _resident_spec((1, K_pad)),      # ||c||^2 (+ padded-cluster mask)
        ],
        out_specs=pl.BlockSpec((TB, K), lambda i: (i, 0)),
        compiler_params=pltpu.CompilerParams(
            dimension_semantics=("parallel",),
            vmem_limit_bytes=vmem_limit),
    )(x, W_c, b2, centers_t, c_norm)


def dec_reference(x, W, b, centers, alpha: float = 1.0):
    """Pure-JAX reference matching the PyTorch forward exactly."""
    z = x @ W + b
    norm_sq = jnp.sum((z[:, None, :] - centers[None, :, :]) ** 2, axis=2)
    num = 1.0 / (1.0 + norm_sq / alpha)
    num = num ** (float(alpha + 1.0) / 2.0)
    return num / jnp.sum(num, axis=1, keepdims=True)


if __name__ == "__main__":
    # Small shapes consistent with the module's forward.
    B, D_in, H, K = 8, 16, 32, 4
    alpha = 1.0

    key = jax.random.PRNGKey(0)
    k_x, k_w, k_b, k_c = jax.random.split(key, 4)

    x = jax.random.normal(k_x, (B, D_in), dtype=jnp.float32)

    # Deterministic synthetic "encoder" parameters (simple linear encoder).
    W = 0.1 * jax.random.normal(k_w, (D_in, H), dtype=jnp.float32)
    b = 0.01 * jax.random.normal(k_b, (H,), dtype=jnp.float32)

    # Cluster centers: Xavier-uniform init as in ClusterAssignment.__init__.
    bound = float(jnp.sqrt(6.0 / (K + H)))
    centers = jax.random.uniform(
        k_c, (K, H), minval=-bound, maxval=bound, dtype=jnp.float32)

    ref = dec_reference(x, W, b, centers, alpha=alpha)

    # --- f32 MXU path ---
    out = jax.block_until_ready(dec_forward(x, W, b, centers, alpha=alpha))
    assert out.shape == (B, K)
    # Tolerance covers the EUP approx reciprocal in the numerator and the
    # ||z||^2 + ||c||^2 - 2 z.c expansion.
    assert jnp.allclose(out, ref, atol=3e-3, rtol=3e-3), "f32 path mismatch vs reference"
    # Exact reciprocal in the normalisation -> rows sum to 1 tightly.
    assert jnp.allclose(jnp.sum(out, axis=1), 1.0, atol=1e-3), "rows must sum to 1"

    # --- bf16 MXU path (v6e/v7x win; f32 accumulation + f32 tail) ---
    out_bf = jax.block_until_ready(
        dec_forward(x, W, b, centers, alpha=alpha, compute_dtype=jnp.bfloat16))
    assert out_bf.shape == (B, K)
    assert jnp.allclose(out_bf, ref, atol=3e-2, rtol=3e-2), "bf16 path mismatch vs reference"
    assert jnp.allclose(jnp.sum(out_bf, axis=1), 1.0, atol=1e-3)

    print("KERNEL_OK")
</pallas_src>

<mosaic_0001>
module attributes {stable_mosaic.version = 11 : i64} {
  func.func @dec_kernel(%arg0: i32, %arg1: memref<8x16xf32, #tpu.memory_space<vmem>>, %arg2: memref<16x32xf32, #tpu.memory_space<vmem>>, %arg3: memref<1x32xf32, #tpu.memory_space<vmem>>, %arg4: memref<32x128xf32, #tpu.memory_space<vmem>>, %arg5: memref<1x128xf32, #tpu.memory_space<vmem>>, %arg6: memref<8x4xf32, #tpu.memory_space<vmem>>) attributes {dimension_semantics = [#tpu.dimension_semantics<parallel>], iteration_bounds = array<i64: 1>, scalar_prefetch = 0 : i64, scratch_operands = 0 : i64, tpu.core_type = #tpu.core_type<tc>, window_params = [{transform_indices = @transform_0, window_bounds = array<i64: 8, 16>}, {pipeline_mode = #tpu.pipeline_mode<synchronous>, transform_indices = @transform_1, window_bounds = array<i64: 16, 32>}, {pipeline_mode = #tpu.pipeline_mode<synchronous>, transform_indices = @transform_2, window_bounds = array<i64: 1, 32>}, {pipeline_mode = #tpu.pipeline_mode<synchronous>, transform_indices = @transform_3, window_bounds = array<i64: 32, 128>}, {pipeline_mode = #tpu.pipeline_mode<synchronous>, transform_indices = @transform_4, window_bounds = array<i64: 1, 128>}, {transform_indices = @transform_5, window_bounds = array<i64: 8, 4>}]} {
    %c0 = arith.constant 0 : index
    %c0_0 = arith.constant 0 : index
    %0 = vector.load %arg1[%c0, %c0_0] : memref<8x16xf32, #tpu.memory_space<vmem>>, vector<8x16xf32>
    %c0_1 = arith.constant 0 : index
    %c0_2 = arith.constant 0 : index
    %1 = vector.load %arg2[%c0_1, %c0_2] : memref<16x32xf32, #tpu.memory_space<vmem>>, vector<16x32xf32>
    %cst = arith.constant dense<0.000000e+00> : vector<8x32xf32>
    %2 = tpu.matmul %0, %1, %cst {dimension_numbers = #tpu.dot_dimension_numbers<[1], [0], [0], [1], [0, 0, 1, 1], [], []>} : vector<8x16xf32>, vector<16x32xf32>, vector<8x32xf32> -> vector<8x32xf32>
    %c0_3 = arith.constant 0 : index
    %c0_4 = arith.constant 0 : index
    %3 = vector.load %arg3[%c0_3, %c0_4] : memref<1x32xf32, #tpu.memory_space<vmem>>, vector<1x32xf32>
    %4 = vector.broadcast %3 : vector<1x32xf32> to vector<8x32xf32>
    %5 = arith.addf %2, %4 : vector<8x32xf32>
    %c0_5 = arith.constant 0 : index
    %c0_6 = arith.constant 0 : index
    %6 = vector.load %arg4[%c0_5, %c0_6] : memref<32x128xf32, #tpu.memory_space<vmem>>, vector<32x128xf32>
    %cst_7 = arith.constant dense<0.000000e+00> : vector<8x128xf32>
    %7 = tpu.matmul %5, %6, %cst_7 {dimension_numbers = #tpu.dot_dimension_numbers<[1], [0], [0], [1], [0, 0, 1, 1], [], []>} : vector<8x32xf32>, vector<32x128xf32>, vector<8x128xf32> -> vector<8x128xf32>
    %8 = arith.mulf %5, %5 : vector<8x32xf32>
    %cst_8 = arith.constant dense<0.000000e+00> : vector<8xf32>
    %9 = vector.multi_reduction <add>, %8, %cst_8 [1] : vector<8x32xf32> to vector<8xf32>
    %10 = vector.shape_cast %9 : vector<8xf32> to vector<8x1xf32>
    %c0_9 = arith.constant 0 : index
    %c0_10 = arith.constant 0 : index
    %11 = vector.load %arg5[%c0_9, %c0_10] : memref<1x128xf32, #tpu.memory_space<vmem>>, vector<1x128xf32>
    %12 = vector.broadcast %10 : vector<8x1xf32> to vector<8x128xf32>
    %13 = vector.broadcast %11 : vector<1x128xf32> to vector<8x128xf32>
    %14 = arith.addf %12, %13 : vector<8x128xf32>
    %cst_11 = arith.constant 2.000000e+00 : f32
    %15 = vector.broadcast %cst_11 : f32 to vector<8x128xf32>
    %16 = arith.mulf %15, %7 : vector<8x128xf32>
    %17 = arith.subf %14, %16 : vector<8x128xf32>
    %cst_12 = arith.constant 0.000000e+00 : f32
    %18 = vector.broadcast %cst_12 : f32 to vector<8x128xf32>
    %19 = arith.maximumf %17, %18 : vector<8x128xf32>
    %cst_13 = arith.constant 1.000000e+00 : f32
    %20 = vector.broadcast %cst_13 : f32 to vector<8x128xf32>
    %21 = arith.mulf %19, %20 : vector<8x128xf32>
    %cst_14 = arith.constant 1.000000e+00 : f32
    %22 = vector.broadcast %cst_14 : f32 to vector<8x128xf32>
    %23 = arith.addf %22, %21 : vector<8x128xf32>
    %24 = tpu.reciprocal %23 {approx = true} : vector<8x128xf32> -> vector<8x128xf32>
    %cst_15 = arith.constant dense<0.000000e+00> : vector<8xf32>
    %25 = vector.multi_reduction <add>, %24, %cst_15 [1] : vector<8x128xf32> to vector<8xf32>
    %26 = vector.shape_cast %25 : vector<8xf32> to vector<8x1xf32>
    %cst_16 = arith.constant 1.000000e-30 : f32
    %27 = vector.broadcast %cst_16 : f32 to vector<8x1xf32>
    %28 = arith.addf %26, %27 : vector<8x1xf32>
    %29 = tpu.reciprocal %28 : vector<8x1xf32> -> vector<8x1xf32>
    %30 = vector.broadcast %29 : vector<8x1xf32> to vector<8x128xf32>
    %31 = arith.mulf %24, %30 : vector<8x128xf32>
    %32 = vector.extract_strided_slice %31 {offsets = [0, 0], sizes = [8, 4], strides = [1, 1]} : vector<8x128xf32> to vector<8x4xf32>
    %c0_17 = arith.constant 0 : index
    %c0_18 = arith.constant 0 : index
    %33 = vector.load %arg6[%c0_17, %c0_18] : memref<8x4xf32, #tpu.memory_space<vmem>>, vector<8x4xf32>
    tpu.vector_store %arg6[%c0_17, %c0_18], %32 {strides = array<i32>} : memref<8x4xf32, #tpu.memory_space<vmem>>, vector<8x4xf32>,
    return
  }
  func.func @transform_0(%arg0: i32) -> (i32, i32) {
    %c0_i32 = arith.constant 0 : i32
    %c0_i32_0 = arith.constant 0 : i32
    return %arg0, %c0_i32 : i32, i32
  }
  func.func @transform_1(%arg0: i32) -> (i32, i32) {
    %c0_i32 = arith.constant 0 : i32
    %c0_i32_0 = arith.constant 0 : i32
    %c0_i32_1 = arith.constant 0 : i32
    return %c0_i32, %c0_i32_0 : i32, i32
  }
  func.func @transform_2(%arg0: i32) -> (i32, i32) {
    %c0_i32 = arith.constant 0 : i32
    %c0_i32_0 = arith.constant 0 : i32
    %c0_i32_1 = arith.constant 0 : i32
    return %c0_i32, %c0_i32_0 : i32, i32
  }
  func.func @transform_3(%arg0: i32) -> (i32, i32) {
    %c0_i32 = arith.constant 0 : i32
    %c0_i32_0 = arith.constant 0 : i32
    %c0_i32_1 = arith.constant 0 : i32
    return %c0_i32, %c0_i32_0 : i32, i32
  }
  func.func @transform_4(%arg0: i32) -> (i32, i32) {
    %c0_i32 = arith.constant 0 : i32
    %c0_i32_0 = arith.constant 0 : i32
    %c0_i32_1 = arith.constant 0 : i32
    return %c0_i32, %c0_i32_0 : i32, i32
  }
  func.func @transform_5(%arg0: i32) -> (i32, i32) {
    %c0_i32 = arith.constant 0 : i32
    %c0_i32_0 = arith.constant 0 : i32
    return %arg0, %c0_i32 : i32, i32
  }
}

</mosaic_0001>

<bundles_post_ra>
// kernel: tpu_custom_call.1
= control target key start
LH: loop header
LB: loop body
LE: loop exit
PB: predicated region body
PF: predicated region fallthrough
CT: control target
= control target key end

     0   :  { %10 = vsyncpa [#allocation3], 0  ;;  %s461_s0 = inlined_call_operand.hbm [shape: f32[8,16], index: 0, kind: input, shape index: {}]   ;;  %s462_s1 = inlined_call_operand.hbm [shape: f32[16,32], index: 1, kind: input, shape index: {}]   ;;  %s463_s2 = inlined_call_operand.vmem [shape: f32[1,32], index: 2, kind: input, shape index: {}]   ;;  %s464_s3 = inlined_call_operand.hbm [shape: f32[32,128], index: 3, kind: input, shape index: {}]   ;;  %s465_s4 = inlined_call_operand.vmem [shape: f32[1,128], index: 4, kind: input, shape index: {}]   ;;  %s466_s5 = inlined_call_operand.vmem [shape: f32[8,4], index: 5, kind: output, shape index: {}]  }
   0x1   :  { %11 = vsyncpa [#allocation5], 0  ;;  %s372_s18 = smov [#allocation4]   ;;  %s302_s22 = scalar_lea.hbm %s462_s1, 256 }
   0x2   :  { %s27_s19 = sshll.u32 %s372_s18, 4  ;;  %p303_p0 = scmp.ne.s32.totalorder %s462_s1, %s302_s22  ;;  %s28_s19 = int_to_ptr.vmem [resolvable:$true] %s27_s19 }
   0x3   :  { %p306_p1 = scmp.lt.u32.totalorder %s302_s22, %s462_s1 }
   0x5   :  { %p308_p2 = pnand %p306_p1, %p303_p0 }
   0x7   :  { %311 = shalt.err (!%p308_p2)
}
   0x8   :  { %s312_s27 = scalar_lea.vmem %s28_s19, 256  ;;  %p317_p4 = scmp.lt.s32.totalorder %s28_s19, %s28_s19 }
   0x9   :  { %p313_p3 = scmp.ne.s32.totalorder %s28_s19, %s312_s27  ;;  %p318_p5 = scmp.lt.s32.totalorder %s312_s27, %s312_s27 }
   0xb   :  { %p319_p6 = por %p318_p5, %p317_p4 }
   0xd   :  { %p320_p7 = pnand %p319_p6, %p313_p3 }
   0xf   :  { %323 = shalt.err (!%p320_p7)
}
  0x10   :  { %s373_s28 = smov 128   ;;  %s374_s29 = smov 8  }
  0x11   :  { %33 = dma.hbm_to_vmem [thread:$0]  %s462_s1, 256, %s28_s19, [#allocation5], %s373_s28, %s373_s28, %s374_s29  }
  0x12   :  { %s375_s7 = smov [#allocation2]   ;;  %s376_s9 = smov [#allocation6]  }
  0x13   :  { %s18_s8 = sshll.u32 %s375_s7, 4  ;;  %s41_s10 = sshll.u32 %s376_s9, 4  ;;  %s19_s8 = int_to_ptr.vmem [resolvable:$true] %s18_s8  ;;  %s42_s10 = int_to_ptr.vmem [resolvable:$true] %s41_s10 }
  0x14   :  { %s324_s13 = scalar_lea.hbm %s461_s0, 128 }
  0x15   :  { %p325_p8 = scmp.ne.s32.totalorder %s461_s0, %s324_s13  ;;  %p328_p9 = scmp.lt.u32.totalorder %s324_s13, %s461_s0 }
  0x17   :  { %p330_p10 = pnand %p328_p9, %p325_p8 }
  0x19   :  { %333 = shalt.err (!%p330_p10)
}
  0x1a   :  { %s334_s1 = scalar_lea.vmem %s19_s8, 128  ;;  %p339_p12 = scmp.lt.s32.totalorder %s19_s8, %s19_s8 }
  0x1b   :  { %p335_p11 = scmp.ne.s32.totalorder %s19_s8, %s334_s1  ;;  %p340_p13 = scmp.lt.s32.totalorder %s334_s1, %s334_s1 }
  0x1d   :  { %p341_p0 = por %p340_p13, %p339_p12 }
  0x1f   :  { %p342_p1 = pnand %p341_p0, %p335_p11 }
  0x21   :  { %345 = shalt.err (!%p342_p1)
}
  0x22   :  { %21 = dma.hbm_to_vmem [thread:$0]  %s461_s0, 128, %s19_s8, [#allocation3]  }
  0x23   :  { %s346_s22 = scalar_lea.hbm %s464_s3, 512 }
  0x24   :  { %p347_p2 = scmp.ne.s32.totalorder %s464_s3, %s346_s22  ;;  %p350_p3 = scmp.lt.u32.totalorder %s346_s22, %s464_s3 }
  0x26   :  { %p352_p4 = pnand %p350_p3, %p347_p2 }
  0x28   :  { %355 = shalt.err (!%p352_p4)
}
  0x29   :  { %s356_s27 = scalar_lea.vmem %s42_s10, 512  ;;  %p361_p6 = scmp.lt.s32.totalorder %s42_s10, %s42_s10 }
  0x2a   :  { %p357_p5 = scmp.ne.s32.totalorder %s42_s10, %s356_s27  ;;  %p362_p7 = scmp.lt.s32.totalorder %s356_s27, %s356_s27 }
  0x2c   :  { %p363_p8 = por %p362_p7, %p361_p6 }
  0x2e   :  { %p364_p9 = pnand %p363_p8, %p357_p5 }
  0x30   :  { %367 = shalt.err (!%p364_p9)
}
  0x31   :  { %47 = dma.hbm_to_vmem [thread:$0]  %s464_s3, 512, %s42_s10, [#allocation5], %s373_s28, %s373_s28, %s374_s29  }
  0x32   :  { %368 = dma.done.wait [#allocation3], 128  }
  0x33   :  { %369 = vsyncadd [#allocation3], 4294967168 }
  0x34   :  { %370 = dma.done.wait [#allocation5], 768  }
  0x35   :  { %371 = vsyncadd [#allocation5], 4294966528  ;;  %v377_v0 = vmov 0.0|0.0   ;;  %vm378_vm0 = vmmov 0   ;;  %v379_v1 = vmov 0.0   ;;  %v60_v2 = vld [vmem:[#allocation4] sm:$0xff] }
  0x36   :  { %281 = vmatprep.subr.bf16.mxu0 %v377_v0  ;;  %267 = vmatprep.mubr.msk.f32.mxu0 %vm378_vm0, %v379_v1  ;;  %v61_v3 = vld [vmem:[#allocation4 + $0x8] sm:$0xff]  ;;  %v143_v5 = vld [vmem:[#allocation6] sm:$0xff]  ;;  %v144_v6 = vld [vmem:[#allocation6 + $0x8] sm:$0xff]  ;;  %vm69_vm1 = vcmask 130048   ;;  %vm147_vm2 = vcmask 261120   ;;  %vm243_vm3 = vcmask 31744  }
  0x37   :  { %284 = vmatprep.subr.bf16.mxu1 %v377_v0  ;;  %278 = vmatprep.mubr.msk.f32.mxu1 %vm378_vm0, %v379_v1  ;;  %v282_v4 = vpack.c.bf16 %v61_v3, %v60_v2  ;;  %v285_v7 = vpack.c.bf16 %v144_v6, %v143_v5  ;;  %v59_v8 = vld [vmem:[#allocation2] sm:$0xff]  ;;  %v145_v9 = vld [vmem:[#allocation6 + $0x10] sm:$0xff]  ;;  %v146_v10 = vld [vmem:[#allocation6 + $0x18] sm:$0xff] }
  0x38   :  { %v288_v11 = vpack.c.bf16 %v146_v10, %v145_v9  ;;  %v251_v12 = vld [vmem:[%s463_s2] ss:$0 sm:$0xff] }
  0x39   :  { %283 = vmatpush3.bf16.msra.mxu0 %v282_v4  ;;  %286 = vmatpush3.bf16.msra.mxu1 %v285_v7  ;;  %v254_v18 = vld [vmem:[%s465_s4] ss:$0 sm:$0xff] }
  0x3a   :  { %287 = vmatprep.subr.bf16.mxu1 %v377_v0 }
  0x3c   :  { %268 = vmatmul.mubr.msk.f32.vlgmr.msra.gmra.mrb[0].mxu0 %vm69_vm1, %v59_v8 }
  0x3d   :  { %289 = vmatpush3.bf16.msra.mxu1 %v288_v11 }
 0x10f   :  { %v139_v13 = vpop.f32.mrb[0].mxu0 }
 0x110   :  { %v140_v14 = vadd.f32 %v251_v12, %v139_v13  ;;  %v269_v15 = vpop.f32.mrb[1].mxu0 }
 0x112   :  { %279 = vmatmul.mubr.msk.f32.vlgmr.msra.gmra.mrb[0].mxu1 %vm147_vm2, %v140_v14  ;;  %v221_v16 = vmul.f32 %v140_v14, %v140_v14 }
 0x114   :  { %v222_v17 = vsel %vm147_vm2, %v221_v16, 0.0 }
 0x115   :  { %223 = vadd.xlane.f32.xlu0 %v222_v17 }
 0x1a2   :  { %v224_v19 = vpop.xlane.xlu0 %223 }
 0x1a3   :  { %v232_v21 = vadd.f32 %v254_v18, %v224_v19 }
 0x1e5   :  { %v217_v20 = vpop.f32.mrb[0].mxu1 }
 0x1e6   :  { %v233_v22 = vmul.f32 2.0, %v217_v20  ;;  %v280_v23 = vpop.f32.mrb[1].mxu1 }
 0x1e8   :  { %v234_v24 = vsub.f32 %v232_v21, %v233_v22 }
 0x1ea   :  { %v235_v25 = vmax.f32 %v234_v24, 0.0 }
 0x1ec   :  { %v236_v26 = vadd.f32 1.0, %v235_v25 }
 0x1ee   :  { %298 = vrcp.f32 %v236_v26 }
 0x1f8   :  { %v299_v27 = vpop.eup %298 }
 0x1f9   :  { %238 = vadd.xlane.f32.xlu0 %v299_v27 }
 0x286   :  { %v239_v28 = vpop.xlane.xlu0 %238 }
 0x287   :  { %v240_v29 = vadd.f32 1e-30, %v239_v28 }
 0x289   :  { %300 = vrcp.f32 %v240_v29 }
 0x293   :  { %v301_v30 = vpop.eup %300 }
 0x294   :  { %v242_v31 = vmul.f32 %v301_v30, %v299_v27 }
 0x296   :  { %244 = vst.msk [vmem:[%s466_s5] sm:$0xff] %vm243_vm3, %v242_v31 }
 0x297   :  { %249 = vsyncpa [#allocation3], 1 }
 0x298   :  { %250 = vsyncpa [#allocation5], 1 }

</bundles_post_ra>
